<compile_context>
chip_gen: v7x
topology: tpu7x:2x2x1
jax: 0.10.0
libtpu: 0.0.40
codegen_flags: <defaults>
</compile_context>

<pallas_src>
import jax
import jax.numpy as jnp
from jax.experimental import pallas as pl
from jax.experimental.pallas import tpu as pltpu

PACK = 16                    # batch rows packed per 128-lane vreg row
IN_F, HID_F, OUT_F = 8, 3, 2


def _mlp_kernel(x_ref, w1_ref, b1_ref, w2_ref, b2_ref, o_ref):
    # x_ref : (TB, 128)   -- TB packed rows, each holding 16 batch rows of 8 feats
    # w1_ref: (128, 48), b1_ref: (1, 48)
    # w2_ref: ( 48, 32), b2_ref: (1, 32)
    # o_ref : (TB, 32)    -- 16 batch rows of 2 outputs per packed row
    x = x_ref[...]
    h = jnp.dot(x, w1_ref[...], preferred_element_type=jnp.float32) + b1_ref[...]
    h = jnp.maximum(h, 0.0)
    y = jnp.dot(h, w2_ref[...], preferred_element_type=jnp.float32) + b2_ref[...]
    o_ref[...] = y.astype(o_ref.dtype)


def policy_forward(x, w1, b1, w2, b2, block_rows=512):
    """Two-layer MLP (8 -> 3 -> relu -> 2) as a single tiled Pallas kernel.

    x : (B, 8) float-like
    w1: (8, 3),  b1: (3,)   -- fcone weights, stored transposed vs. torch (3, 8)
    w2: (3, 2),  b2: (2,)   -- fctwo weights, stored transposed vs. torch (2, 3)
    block_rows: packed-row tile size (each packed row = 16 batch rows).
    returns (B, 2) float32
    """
    x = jnp.asarray(x, dtype=jnp.float32)
    B = x.shape[0]

    # --- choose tile size (in packed rows) and pad the batch accordingly ---
    bp_needed = -(-B // PACK)                          # ceil(B / 16)
    tb = min(block_rows, ((bp_needed + 7) // 8) * 8)   # multiple of 8 sublanes
    n_blocks = -(-bp_needed // tb)                     # grid size
    bp = n_blocks * tb                                 # padded packed rows
    b_pad = bp * PACK                                  # padded batch rows
    if b_pad != B:
        x = jnp.pad(x, ((0, b_pad - B), (0, 0)))
    xp = x.reshape(bp, PACK * IN_F)                    # (bp, 128), free reshape

    # --- block-diagonal weights (built once, stay resident in VMEM) ---
    f32 = jnp.float32
    eye = jnp.eye(PACK, dtype=f32)
    w1_big = jnp.kron(eye, jnp.asarray(w1, f32))       # (128, 48)
    w2_big = jnp.kron(eye, jnp.asarray(w2, f32))       # ( 48, 32)
    b1_big = jnp.tile(jnp.asarray(b1, f32), PACK).reshape(1, PACK * HID_F)
    b2_big = jnp.tile(jnp.asarray(b2, f32), PACK).reshape(1, PACK * OUT_F)

    out_packed = pl.pallas_call(
        _mlp_kernel,
        out_shape=jax.ShapeDtypeStruct((bp, PACK * OUT_F), jnp.float32),
        grid=(n_blocks,),
        in_specs=[
            pl.BlockSpec((tb, PACK * IN_F), lambda i: (i, 0)),   # x tiles
            pl.BlockSpec(w1_big.shape, lambda i: (0, 0)),        # resident
            pl.BlockSpec(b1_big.shape, lambda i: (0, 0)),
            pl.BlockSpec(w2_big.shape, lambda i: (0, 0)),
            pl.BlockSpec(b2_big.shape, lambda i: (0, 0)),
        ],
        out_specs=pl.BlockSpec((tb, PACK * OUT_F), lambda i: (i, 0)),
        compiler_params=pltpu.CompilerParams(
            dimension_semantics=("parallel",),                   # megacore on v7x
        ),
    )(xp, w1_big, b1_big, w2_big, b2_big)

    # free reshape back to (B, 2); drop the batch padding.
    return out_packed.reshape(b_pad, OUT_F)[:B]


def init_params(key):
    """Deterministic init mimicking nn.Linear's U(-1/sqrt(in), 1/sqrt(in))."""
    k1, k2, k3, k4 = jax.random.split(key, 4)
    bound1 = 1.0 / jnp.sqrt(8.0)
    bound2 = 1.0 / jnp.sqrt(3.0)
    # stored as (in_features, out_features) == torch weight transposed
    w1 = jax.random.uniform(k1, (IN_F, HID_F), jnp.float32, -bound1, bound1)
    b1 = jax.random.uniform(k2, (HID_F,), jnp.float32, -bound1, bound1)
    w2 = jax.random.uniform(k3, (HID_F, OUT_F), jnp.float32, -bound2, bound2)
    b2 = jax.random.uniform(k4, (OUT_F,), jnp.float32, -bound2, bound2)
    return w1, b1, w2, b2


if __name__ == "__main__":
    key = jax.random.PRNGKey(0)
    pkey, xkey = jax.random.split(key)

    w1, b1, w2, b2 = init_params(pkey)

    # small batch (deliberately not a multiple of 16 to exercise padding)
    B = 37
    x = jax.random.normal(xkey, (B, IN_F), dtype=jnp.float32)

    out = policy_forward(x, w1, b1, w2, b2)
    out = jax.block_until_ready(out)

    # reference check in plain JAX
    ref = jnp.maximum(x @ w1 + b1, 0.0) @ w2 + b2
    assert out.shape == (B, OUT_F)
    assert jnp.allclose(out, ref, atol=1e-5, rtol=1e-5)

    # NOTE: for genuinely tiny batches like this, plain jnp / XLA fusion would
    # beat the pallas_call dispatch cost; the kernel is designed for large B.
    print("KERNEL_OK")
</pallas_src>

<mosaic_0001>
module attributes {stable_mosaic.version = 11 : i64} {
  func.func @_mlp_kernel(%arg0: i32, %arg1: memref<8x128xf32, #tpu.memory_space<vmem>>, %arg2: memref<128x48xf32, #tpu.memory_space<vmem>>, %arg3: memref<1x48xf32, #tpu.memory_space<vmem>>, %arg4: memref<48x32xf32, #tpu.memory_space<vmem>>, %arg5: memref<1x32xf32, #tpu.memory_space<vmem>>, %arg6: memref<8x32xf32, #tpu.memory_space<vmem>>) attributes {dimension_semantics = [#tpu.dimension_semantics<parallel>], iteration_bounds = array<i64: 1>, scalar_prefetch = 0 : i64, scratch_operands = 0 : i64, tpu.core_type = #tpu.core_type<tc>, window_params = [{transform_indices = @transform_0, window_bounds = array<i64: 8, 128>}, {pipeline_mode = #tpu.pipeline_mode<synchronous>, transform_indices = @transform_1, window_bounds = array<i64: 128, 48>}, {pipeline_mode = #tpu.pipeline_mode<synchronous>, transform_indices = @transform_2, window_bounds = array<i64: 1, 48>}, {pipeline_mode = #tpu.pipeline_mode<synchronous>, transform_indices = @transform_3, window_bounds = array<i64: 48, 32>}, {pipeline_mode = #tpu.pipeline_mode<synchronous>, transform_indices = @transform_4, window_bounds = array<i64: 1, 32>}, {transform_indices = @transform_5, window_bounds = array<i64: 8, 32>}]} {
    %c0 = arith.constant 0 : index
    %c0_0 = arith.constant 0 : index
    %0 = vector.load %arg1[%c0, %c0_0] : memref<8x128xf32, #tpu.memory_space<vmem>>, vector<8x128xf32>
    %c0_1 = arith.constant 0 : index
    %c0_2 = arith.constant 0 : index
    %1 = vector.load %arg2[%c0_1, %c0_2] : memref<128x48xf32, #tpu.memory_space<vmem>>, vector<128x48xf32>
    %cst = arith.constant dense<0.000000e+00> : vector<8x48xf32>
    %2 = tpu.matmul %0, %1, %cst {dimension_numbers = #tpu.dot_dimension_numbers<[1], [0], [0], [1], [0, 0, 1, 1], [], []>} : vector<8x128xf32>, vector<128x48xf32>, vector<8x48xf32> -> vector<8x48xf32>
    %c0_3 = arith.constant 0 : index
    %c0_4 = arith.constant 0 : index
    %3 = vector.load %arg3[%c0_3, %c0_4] : memref<1x48xf32, #tpu.memory_space<vmem>>, vector<1x48xf32>
    %4 = vector.broadcast %3 : vector<1x48xf32> to vector<8x48xf32>
    %5 = arith.addf %2, %4 : vector<8x48xf32>
    %cst_5 = arith.constant 0.000000e+00 : f32
    %6 = vector.broadcast %cst_5 : f32 to vector<8x48xf32>
    %7 = arith.maximumf %5, %6 : vector<8x48xf32>
    %c0_6 = arith.constant 0 : index
    %c0_7 = arith.constant 0 : index
    %8 = vector.load %arg4[%c0_6, %c0_7] : memref<48x32xf32, #tpu.memory_space<vmem>>, vector<48x32xf32>
    %cst_8 = arith.constant dense<0.000000e+00> : vector<8x32xf32>
    %9 = tpu.matmul %7, %8, %cst_8 {dimension_numbers = #tpu.dot_dimension_numbers<[1], [0], [0], [1], [0, 0, 1, 1], [], []>} : vector<8x48xf32>, vector<48x32xf32>, vector<8x32xf32> -> vector<8x32xf32>
    %c0_9 = arith.constant 0 : index
    %c0_10 = arith.constant 0 : index
    %10 = vector.load %arg5[%c0_9, %c0_10] : memref<1x32xf32, #tpu.memory_space<vmem>>, vector<1x32xf32>
    %11 = vector.broadcast %10 : vector<1x32xf32> to vector<8x32xf32>
    %12 = arith.addf %9, %11 : vector<8x32xf32>
    %c0_11 = arith.constant 0 : index
    %c0_12 = arith.constant 0 : index
    %13 = vector.load %arg6[%c0_11, %c0_12] : memref<8x32xf32, #tpu.memory_space<vmem>>, vector<8x32xf32>
    tpu.vector_store %arg6[%c0_11, %c0_12], %12 {strides = array<i32>} : memref<8x32xf32, #tpu.memory_space<vmem>>, vector<8x32xf32>,
    return
  }
  func.func @transform_0(%arg0: i32) -> (i32, i32) {
    %c0_i32 = arith.constant 0 : i32
    %c0_i32_0 = arith.constant 0 : i32
    return %arg0, %c0_i32 : i32, i32
  }
  func.func @transform_1(%arg0: i32) -> (i32, i32) {
    %c0_i32 = arith.constant 0 : i32
    %c0_i32_0 = arith.constant 0 : i32
    %c0_i32_1 = arith.constant 0 : i32
    return %c0_i32, %c0_i32_0 : i32, i32
  }
  func.func @transform_2(%arg0: i32) -> (i32, i32) {
    %c0_i32 = arith.constant 0 : i32
    %c0_i32_0 = arith.constant 0 : i32
    %c0_i32_1 = arith.constant 0 : i32
    return %c0_i32, %c0_i32_0 : i32, i32
  }
  func.func @transform_3(%arg0: i32) -> (i32, i32) {
    %c0_i32 = arith.constant 0 : i32
    %c0_i32_0 = arith.constant 0 : i32
    %c0_i32_1 = arith.constant 0 : i32
    return %c0_i32, %c0_i32_0 : i32, i32
  }
  func.func @transform_4(%arg0: i32) -> (i32, i32) {
    %c0_i32 = arith.constant 0 : i32
    %c0_i32_0 = arith.constant 0 : i32
    %c0_i32_1 = arith.constant 0 : i32
    return %c0_i32, %c0_i32_0 : i32, i32
  }
  func.func @transform_5(%arg0: i32) -> (i32, i32) {
    %c0_i32 = arith.constant 0 : i32
    %c0_i32_0 = arith.constant 0 : i32
    return %arg0, %c0_i32 : i32, i32
  }
}

</mosaic_0001>

<bundles_post_ra>
// kernel: tpu_custom_call.1
= control target key start
LH: loop header
LB: loop body
LE: loop exit
PB: predicated region body
PF: predicated region fallthrough
CT: control target
= control target key end

     0   :  { %v357_v3 = vmov 0.0|0.0   ;;  %vm358_vm0 = vmmov 0   ;;  %v359_v6 = vmov 0.0   ;;  %s478_s0 = inlined_call_operand.vmem [shape: f32[8,128], index: 0, kind: input, shape index: {}]   ;;  %s479_s1 = inlined_call_operand.vmem [shape: f32[128,48], index: 1, kind: input, shape index: {}]   ;;  %s480_s2 = inlined_call_operand.vmem [shape: f32[1,48], index: 2, kind: input, shape index: {}]   ;;  %s481_s3 = inlined_call_operand.vmem [shape: f32[48,32], index: 3, kind: input, shape index: {}]   ;;  %s482_s4 = inlined_call_operand.vmem [shape: f32[1,32], index: 4, kind: input, shape index: {}]   ;;  %s483_s5 = inlined_call_operand.hbm [shape: f32[8,32], index: 5, kind: output, shape index: {}]  }
   0x1   :  { %v22_v0 = vld [vmem:[%s479_s1] sm:$0xff]  ;;  %v23_v1 = vld [vmem:[%s479_s1 + $0x8] sm:$0xff]  ;;  %v24_v2 = vld [vmem:[%s479_s1 + $0x10] sm:$0xff]  ;;  %296 = vmatprep.subr.bf16.mxu0 %v357_v3  ;;  %278 = vmatprep.mubr.msk.f32.mxu0 %vm358_vm0, %v359_v6 }
   0x2   :  { %v297_v4 = vpack.c.bf16 %v23_v1, %v22_v0  ;;  %v25_v5 = vld [vmem:[%s479_s1 + $0x18] sm:$0xff]  ;;  %320 = vmatprep.subr.bf16.mxu1 %v357_v3  ;;  %293 = vmatprep.mubr.msk.f32.mxu1 %vm358_vm0, %v359_v6  ;;  %v26_v8 = vld [vmem:[%s479_s1 + $0x20] sm:$0xff]  ;;  %v27_v9 = vld [vmem:[%s479_s1 + $0x28] sm:$0xff] }
   0x3   :  { %v300_v7 = vpack.c.bf16 %v25_v5, %v24_v2  ;;  %v116_v10 = vld [vmem:[%s481_s3] sm:$0xff]  ;;  %v117_v11 = vld [vmem:[%s481_s3 + $0x8] sm:$0xff]  ;;  %v118_v12 = vld [vmem:[%s481_s3 + $0x10] sm:$0xff]  ;;  %v303_v14 = vpack.c.bf16 %v27_v9, %v26_v8 }
   0x4   :  { %298 = vmatpush3.bf16.msra.mxu0 %v297_v4  ;;  %v119_v13 = vld [vmem:[%s481_s3 + $0x18] sm:$0xff]  ;;  %v321_v15 = vpack.c.bf16 %v117_v11, %v116_v10 }
   0x5   :  { %299 = vmatprep.subr.bf16.mxu0 %v357_v3 }
   0x8   :  { %301 = vmatpush3.bf16.msra.mxu0 %v300_v7 }
   0x9   :  { %10 = vsyncpa [#allocation3], 0  ;;  %302 = vmatprep.subr.bf16.mxu0 %v357_v3  ;;  %v28_v16 = vld [vmem:[%s479_s1 + $0x30] sm:$0xff]  ;;  %v29_v17 = vld [vmem:[%s479_s1 + $0x38] sm:$0xff]  ;;  %322 = vmatpush3.bf16.msra.mxu1 %v321_v15  ;;  %v324_v18 = vpack.c.bf16 %v119_v13, %v118_v12  ;;  %vm129_vm1 = vcmask 392192   ;;  %s360_s16 = smov [#allocation2]  }
   0xa   :  { %323 = vmatprep.subr.bf16.mxu1 %v357_v3  ;;  %v306_v19 = vpack.c.bf16 %v29_v17, %v28_v16  ;;  %v30_v20 = vld [vmem:[%s479_s1 + $0x40] sm:$0xff]  ;;  %v31_v21 = vld [vmem:[%s479_s1 + $0x48] sm:$0xff]  ;;  %v32_v23 = vld [vmem:[%s479_s1 + $0x50] sm:$0xff]  ;;  %s211_s17 = sshll.u32 %s360_s16, 4  ;;  %vm203_vm2 = vcmask 261120   ;;  %s212_s17 = int_to_ptr.vmem [resolvable:$true] %s211_s17 }
   0xb   :  { %v309_v22 = vpack.c.bf16 %v31_v21, %v30_v20  ;;  %v33_v24 = vld [vmem:[%s479_s1 + $0x58] sm:$0xff]  ;;  %v34_v26 = vld [vmem:[%s479_s1 + $0x60] sm:$0xff]  ;;  %v35_v27 = vld [vmem:[%s479_s1 + $0x68] sm:$0xff]  ;;  %p338_p1 = scmp.lt.s32.totalorder %s212_s17, %s212_s17 }
   0xc   :  { %304 = vmatpush3.bf16.msra.mxu0 %v303_v14  ;;  %v312_v25 = vpack.c.bf16 %v33_v24, %v32_v23  ;;  %v315_v28 = vpack.c.bf16 %v35_v27, %v34_v26  ;;  %v36_v29 = vld [vmem:[%s479_s1 + $0x70] sm:$0xff]  ;;  %v37_v30 = vld [vmem:[%s479_s1 + $0x78] sm:$0xff]  ;;  %v21_v32 = vld [vmem:[%s478_s0] sm:$0xff] }
   0xd   :  { %305 = vmatprep.subr.bf16.mxu0 %v357_v3  ;;  %325 = vmatpush3.bf16.msra.mxu1 %v324_v18  ;;  %v318_v31 = vpack.c.bf16 %v37_v30, %v36_v29  ;;  %v120_v33 = vld [vmem:[%s481_s3 + $0x20] sm:$0xff]  ;;  %v121_v34 = vld [vmem:[%s481_s3 + $0x28] sm:$0xff]  ;;  %s333_s3 = scalar_lea.vmem %s212_s17, 128 }
   0xe   :  { %326 = vmatprep.subr.bf16.mxu1 %v357_v3  ;;  %v327_v35 = vpack.c.bf16 %v121_v34, %v120_v33  ;;  %v219_v36 = vld [vmem:[%s480_s2] ss:$0 sm:$0xff]  ;;  %p334_p0 = scmp.ne.s32.totalorder %s212_s17, %s333_s3  ;;  %p339_p2 = scmp.lt.s32.totalorder %s333_s3, %s333_s3 }
   0xf   :  { %v220_v41 = vld [vmem:[%s482_s4] ss:$0 sm:$0xff] }
  0x10   :  { %307 = vmatpush3.bf16.msra.mxu0 %v306_v19  ;;  %p340_p3 = por %p339_p2, %p338_p1 }
  0x11   :  { %308 = vmatprep.subr.bf16.mxu0 %v357_v3  ;;  %328 = vmatpush3.bf16.msra.mxu1 %v327_v35 }
  0x12   :  { %p341_p4 = pnand %p340_p3, %p334_p0 }
  0x14   :  { %310 = vmatpush3.bf16.msra.mxu0 %v309_v22 }
  0x15   :  { %311 = vmatprep.subr.bf16.mxu0 %v357_v3 }
  0x18   :  { %313 = vmatpush3.bf16.msra.mxu0 %v312_v25 }
  0x19   :  { %314 = vmatprep.subr.bf16.mxu0 %v357_v3 }
  0x1c   :  { %316 = vmatpush3.bf16.msra.mxu0 %v315_v28 }
  0x1d   :  { %317 = vmatprep.subr.bf16.mxu0 %v357_v3 }
  0x20   :  { %319 = vmatpush3.bf16.msra.mxu0 %v318_v31 }
  0x23   :  { %279 = vmatmul.mubr.f32.vlgmr.msra.gmra.mrb[0].mxu0 %v21_v32 }
  0xf6   :  { %v111_v37 = vpop.f32.mrb[0].mxu0 }
  0xf7   :  { %v112_v38 = vadd.f32 %v219_v36, %v111_v37  ;;  %v280_v39 = vpop.f32.mrb[1].mxu0 }
  0xf9   :  { %v115_v40 = vmax.f32 %v112_v38, 0.0 }
  0xfb   :  { %294 = vmatmul.mubr.msk.f32.vlgmr.msra.gmra.mrb[0].mxu1 %vm129_vm1, %v115_v40 }
 0x1ce   :  { %v199_v42 = vpop.f32.mrb[0].mxu1 }
 0x1cf   :  { %v200_v43 = vadd.f32 %v220_v41, %v199_v42  ;;  %v295_v44 = vpop.f32.mrb[1].mxu1 }
 0x1d1   :  { %204 = vst.msk [vmem:[#allocation2] sm:$0xff] %vm203_vm2, %v200_v43 }
 0x1d2   :  { %344 = shalt.err (!%p341_p4)
}
 0x1d3   :  { %s345_s19 = scalar_lea.hbm %s483_s5, 128 }
 0x1d4   :  { %p346_p5 = scmp.ne.s32.totalorder %s483_s5, %s345_s19  ;;  %p349_p6 = scmp.lt.u32.totalorder %s345_s19, %s483_s5 }
 0x1d6   :  { %p351_p7 = pnand %p349_p6, %p346_p5 }
 0x1d8   :  { %354 = shalt.err (!%p351_p7)
}
 0x1d9   :  { %214 = dma.vmem_to_hbm [thread:$0]  %s212_s17, 128, %s483_s5, [#allocation3]  }
 0x1da   :  { %355 = dma.done.wait [#allocation3], 128  }
 0x1db   :  { %356 = vsyncadd [#allocation3], 4294967168 }
 0x1dc   :  { %218 = vsyncpa [#allocation3], 1 }

</bundles_post_ra>
